<compile_context>
chip_gen: v7x
topology: tpu7x:2x2x1
jax: 0.10.0
libtpu: 0.0.40
codegen_flags: <defaults>
</compile_context>

<pallas_src>
import jax
import jax.numpy as jnp
from jax import lax
from jax.experimental import pallas as pl
from jax.experimental.pallas import tpu as pltpu


def _gather_kernel(idx_ref, rot_ref, trans_ref, rot_out_ref, trans_out_ref):
    """Row-gather from two small parameter tables.

    idx_ref       : (B,)            int32   (SMEM)  camera indices
    rot_ref       : (num_camera, 4) float32 (VMEM)
    trans_ref     : (num_camera, 3) float32 (VMEM)
    rot_out_ref   : (B, 4)          float32 (VMEM)
    trans_out_ref : (B, 3)          float32 (VMEM)
    """
    num_camera = rot_ref.shape[0]
    batch = rot_out_ref.shape[0]

    def body(i, carry):
        c = idx_ref[i]                                   # scalar SMEM read
        c = jnp.where(c < 0, c + num_camera, c)          # PyTorch-style negative wrap
        # Dynamic single-row (sublane) copies; stays 2D so layouts are trivial.
        rot_out_ref[pl.ds(i, 1), :] = rot_ref[pl.ds(c, 1), :]
        trans_out_ref[pl.ds(i, 1), :] = trans_ref[pl.ds(c, 1), :]
        return carry

    # Small static trip count -> fully unroll for LLO scheduler visibility.
    lax.fori_loop(0, batch, body, 0, unroll=True)


def extrinsic_model2_forward(camera_idx, rotations, translations):
    """Pallas implementation of ExtrinsicModel2.forward.

    camera_idx   : int array, shape (B,)
    rotations    : float32 array, shape (num_camera, 4)
    translations : float32 array, shape (num_camera, 3)

    Returns (rot_delta, trans_delta) with shapes (B, 4) and (B, 3).
    """
    camera_idx = camera_idx.astype(jnp.int32)
    b = camera_idx.shape[0]

    rot_out, trans_out = pl.pallas_call(
        _gather_kernel,
        out_shape=(
            jax.ShapeDtypeStruct((b, rotations.shape[1]), rotations.dtype),
            jax.ShapeDtypeStruct((b, translations.shape[1]), translations.dtype),
        ),
        in_specs=[
            pl.BlockSpec(memory_space=pltpu.MemorySpace.SMEM),   # camera_idx
            pl.BlockSpec(memory_space=pltpu.MemorySpace.VMEM),   # rotations
            pl.BlockSpec(memory_space=pltpu.MemorySpace.VMEM),   # translations
        ],
        out_specs=(
            pl.BlockSpec(memory_space=pltpu.MemorySpace.VMEM),   # rot_delta
            pl.BlockSpec(memory_space=pltpu.MemorySpace.VMEM),   # trans_delta
        ),
    )(camera_idx, rotations, translations)

    return rot_out, trans_out


if __name__ == "__main__":
    key = jax.random.PRNGKey(0)

    # Module parameters, initialized exactly as in ExtrinsicModel2.__init__:
    num_camera = 4
    rotations = jnp.tile(jnp.array([1.0, 0.0, 0.0, 0.0], jnp.float32),
                         (num_camera, 1))                          # (num_camera, 4)
    translations = jnp.zeros((num_camera, 3), dtype=jnp.float32)   # (num_camera, 3)

    # Small deterministic input batch of camera indices.
    batch = 8
    camera_idx = jax.random.randint(key, (batch,), 0, num_camera, dtype=jnp.int32)

    rot_delta, trans_delta = extrinsic_model2_forward(camera_idx, rotations, translations)
    rot_delta = jax.block_until_ready(rot_delta)
    trans_delta = jax.block_until_ready(trans_delta)

    # Reference (pure JAX) check of the gather semantics.
    rot_ref = rotations[camera_idx]
    trans_ref = translations[camera_idx]
    assert rot_delta.shape == (batch, 4) and trans_delta.shape == (batch, 3)
    assert jnp.array_equal(rot_delta, rot_ref)
    assert jnp.array_equal(trans_delta, trans_ref)

    print("KERNEL_OK")
</pallas_src>

<mosaic_0001>
module attributes {stable_mosaic.version = 11 : i64} {
  func.func @_gather_kernel(%arg0: memref<8xi32, #tpu.memory_space<smem>>, %arg1: memref<4x4xf32, #tpu.memory_space<vmem>>, %arg2: memref<4x3xf32, #tpu.memory_space<vmem>>, %arg3: memref<8x4xf32, #tpu.memory_space<vmem>>, %arg4: memref<8x3xf32, #tpu.memory_space<vmem>>) attributes {dimension_semantics = [], scalar_prefetch = 0 : i64, scratch_operands = 0 : i64, tpu.core_type = #tpu.core_type<tc>} {
    %c0_i32 = arith.constant 0 : i32
    %0 = arith.index_cast %c0_i32 : i32 to index
    %1 = memref.load %arg0[%0] : memref<8xi32, #tpu.memory_space<smem>>
    %c0_i32_0 = arith.constant 0 : i32
    %2 = arith.cmpi slt, %1, %c0_i32_0 : i32
    %c4_i32 = arith.constant 4 : i32
    %3 = arith.addi %1, %c4_i32 : i32
    %4 = arith.select %2, %3, %1 : i32
    %5 = arith.index_cast %4 : i32 to index
    %c0 = arith.constant 0 : index
    %6 = vector.load %arg1[%5, %c0] : memref<4x4xf32, #tpu.memory_space<vmem>>, vector<1x4xf32>
    %7 = arith.index_cast %c0_i32 : i32 to index
    %c0_1 = arith.constant 0 : index
    %8 = vector.load %arg3[%7, %c0_1] : memref<8x4xf32, #tpu.memory_space<vmem>>, vector<1x4xf32>
    tpu.vector_store %arg3[%7, %c0_1], %6 {strides = array<i32>} : memref<8x4xf32, #tpu.memory_space<vmem>>, vector<1x4xf32>,
    %9 = arith.index_cast %4 : i32 to index
    %c0_2 = arith.constant 0 : index
    %10 = vector.load %arg2[%9, %c0_2] : memref<4x3xf32, #tpu.memory_space<vmem>>, vector<1x3xf32>
    %11 = arith.index_cast %c0_i32 : i32 to index
    %c0_3 = arith.constant 0 : index
    %12 = vector.load %arg4[%11, %c0_3] : memref<8x3xf32, #tpu.memory_space<vmem>>, vector<1x3xf32>
    tpu.vector_store %arg4[%11, %c0_3], %10 {strides = array<i32>} : memref<8x3xf32, #tpu.memory_space<vmem>>, vector<1x3xf32>,
    %c1_i32 = arith.constant 1 : i32
    %13 = arith.index_cast %c1_i32 : i32 to index
    %14 = memref.load %arg0[%13] : memref<8xi32, #tpu.memory_space<smem>>
    %c0_i32_4 = arith.constant 0 : i32
    %15 = arith.cmpi slt, %14, %c0_i32_4 : i32
    %c4_i32_5 = arith.constant 4 : i32
    %16 = arith.addi %14, %c4_i32_5 : i32
    %17 = arith.select %15, %16, %14 : i32
    %18 = arith.index_cast %17 : i32 to index
    %c0_6 = arith.constant 0 : index
    %19 = vector.load %arg1[%18, %c0_6] : memref<4x4xf32, #tpu.memory_space<vmem>>, vector<1x4xf32>
    %20 = arith.index_cast %c1_i32 : i32 to index
    %c0_7 = arith.constant 0 : index
    %21 = vector.load %arg3[%20, %c0_7] : memref<8x4xf32, #tpu.memory_space<vmem>>, vector<1x4xf32>
    tpu.vector_store %arg3[%20, %c0_7], %19 {strides = array<i32>} : memref<8x4xf32, #tpu.memory_space<vmem>>, vector<1x4xf32>,
    %22 = arith.index_cast %17 : i32 to index
    %c0_8 = arith.constant 0 : index
    %23 = vector.load %arg2[%22, %c0_8] : memref<4x3xf32, #tpu.memory_space<vmem>>, vector<1x3xf32>
    %24 = arith.index_cast %c1_i32 : i32 to index
    %c0_9 = arith.constant 0 : index
    %25 = vector.load %arg4[%24, %c0_9] : memref<8x3xf32, #tpu.memory_space<vmem>>, vector<1x3xf32>
    tpu.vector_store %arg4[%24, %c0_9], %23 {strides = array<i32>} : memref<8x3xf32, #tpu.memory_space<vmem>>, vector<1x3xf32>,
    %c2_i32 = arith.constant 2 : i32
    %26 = arith.index_cast %c2_i32 : i32 to index
    %27 = memref.load %arg0[%26] : memref<8xi32, #tpu.memory_space<smem>>
    %c0_i32_10 = arith.constant 0 : i32
    %28 = arith.cmpi slt, %27, %c0_i32_10 : i32
    %c4_i32_11 = arith.constant 4 : i32
    %29 = arith.addi %27, %c4_i32_11 : i32
    %30 = arith.select %28, %29, %27 : i32
    %31 = arith.index_cast %30 : i32 to index
    %c0_12 = arith.constant 0 : index
    %32 = vector.load %arg1[%31, %c0_12] : memref<4x4xf32, #tpu.memory_space<vmem>>, vector<1x4xf32>
    %33 = arith.index_cast %c2_i32 : i32 to index
    %c0_13 = arith.constant 0 : index
    %34 = vector.load %arg3[%33, %c0_13] : memref<8x4xf32, #tpu.memory_space<vmem>>, vector<1x4xf32>
    tpu.vector_store %arg3[%33, %c0_13], %32 {strides = array<i32>} : memref<8x4xf32, #tpu.memory_space<vmem>>, vector<1x4xf32>,
    %35 = arith.index_cast %30 : i32 to index
    %c0_14 = arith.constant 0 : index
    %36 = vector.load %arg2[%35, %c0_14] : memref<4x3xf32, #tpu.memory_space<vmem>>, vector<1x3xf32>
    %37 = arith.index_cast %c2_i32 : i32 to index
    %c0_15 = arith.constant 0 : index
    %38 = vector.load %arg4[%37, %c0_15] : memref<8x3xf32, #tpu.memory_space<vmem>>, vector<1x3xf32>
    tpu.vector_store %arg4[%37, %c0_15], %36 {strides = array<i32>} : memref<8x3xf32, #tpu.memory_space<vmem>>, vector<1x3xf32>,
    %c3_i32 = arith.constant 3 : i32
    %39 = arith.index_cast %c3_i32 : i32 to index
    %40 = memref.load %arg0[%39] : memref<8xi32, #tpu.memory_space<smem>>
    %c0_i32_16 = arith.constant 0 : i32
    %41 = arith.cmpi slt, %40, %c0_i32_16 : i32
    %c4_i32_17 = arith.constant 4 : i32
    %42 = arith.addi %40, %c4_i32_17 : i32
    %43 = arith.select %41, %42, %40 : i32
    %44 = arith.index_cast %43 : i32 to index
    %c0_18 = arith.constant 0 : index
    %45 = vector.load %arg1[%44, %c0_18] : memref<4x4xf32, #tpu.memory_space<vmem>>, vector<1x4xf32>
    %46 = arith.index_cast %c3_i32 : i32 to index
    %c0_19 = arith.constant 0 : index
    %47 = vector.load %arg3[%46, %c0_19] : memref<8x4xf32, #tpu.memory_space<vmem>>, vector<1x4xf32>
    tpu.vector_store %arg3[%46, %c0_19], %45 {strides = array<i32>} : memref<8x4xf32, #tpu.memory_space<vmem>>, vector<1x4xf32>,
    %48 = arith.index_cast %43 : i32 to index
    %c0_20 = arith.constant 0 : index
    %49 = vector.load %arg2[%48, %c0_20] : memref<4x3xf32, #tpu.memory_space<vmem>>, vector<1x3xf32>
    %50 = arith.index_cast %c3_i32 : i32 to index
    %c0_21 = arith.constant 0 : index
    %51 = vector.load %arg4[%50, %c0_21] : memref<8x3xf32, #tpu.memory_space<vmem>>, vector<1x3xf32>
    tpu.vector_store %arg4[%50, %c0_21], %49 {strides = array<i32>} : memref<8x3xf32, #tpu.memory_space<vmem>>, vector<1x3xf32>,
    %c4_i32_22 = arith.constant 4 : i32
    %52 = arith.index_cast %c4_i32_22 : i32 to index
    %53 = memref.load %arg0[%52] : memref<8xi32, #tpu.memory_space<smem>>
    %c0_i32_23 = arith.constant 0 : i32
    %54 = arith.cmpi slt, %53, %c0_i32_23 : i32
    %c4_i32_24 = arith.constant 4 : i32
    %55 = arith.addi %53, %c4_i32_24 : i32
    %56 = arith.select %54, %55, %53 : i32
    %57 = arith.index_cast %56 : i32 to index
    %c0_25 = arith.constant 0 : index
    %58 = vector.load %arg1[%57, %c0_25] : memref<4x4xf32, #tpu.memory_space<vmem>>, vector<1x4xf32>
    %59 = arith.index_cast %c4_i32_22 : i32 to index
    %c0_26 = arith.constant 0 : index
    %60 = vector.load %arg3[%59, %c0_26] : memref<8x4xf32, #tpu.memory_space<vmem>>, vector<1x4xf32>
    tpu.vector_store %arg3[%59, %c0_26], %58 {strides = array<i32>} : memref<8x4xf32, #tpu.memory_space<vmem>>, vector<1x4xf32>,
    %61 = arith.index_cast %56 : i32 to index
    %c0_27 = arith.constant 0 : index
    %62 = vector.load %arg2[%61, %c0_27] : memref<4x3xf32, #tpu.memory_space<vmem>>, vector<1x3xf32>
    %63 = arith.index_cast %c4_i32_22 : i32 to index
    %c0_28 = arith.constant 0 : index
    %64 = vector.load %arg4[%63, %c0_28] : memref<8x3xf32, #tpu.memory_space<vmem>>, vector<1x3xf32>
    tpu.vector_store %arg4[%63, %c0_28], %62 {strides = array<i32>} : memref<8x3xf32, #tpu.memory_space<vmem>>, vector<1x3xf32>,
    %c5_i32 = arith.constant 5 : i32
    %65 = arith.index_cast %c5_i32 : i32 to index
    %66 = memref.load %arg0[%65] : memref<8xi32, #tpu.memory_space<smem>>
    %c0_i32_29 = arith.constant 0 : i32
    %67 = arith.cmpi slt, %66, %c0_i32_29 : i32
    %c4_i32_30 = arith.constant 4 : i32
    %68 = arith.addi %66, %c4_i32_30 : i32
    %69 = arith.select %67, %68, %66 : i32
    %70 = arith.index_cast %69 : i32 to index
    %c0_31 = arith.constant 0 : index
    %71 = vector.load %arg1[%70, %c0_31] : memref<4x4xf32, #tpu.memory_space<vmem>>, vector<1x4xf32>
    %72 = arith.index_cast %c5_i32 : i32 to index
    %c0_32 = arith.constant 0 : index
    %73 = vector.load %arg3[%72, %c0_32] : memref<8x4xf32, #tpu.memory_space<vmem>>, vector<1x4xf32>
    tpu.vector_store %arg3[%72, %c0_32], %71 {strides = array<i32>} : memref<8x4xf32, #tpu.memory_space<vmem>>, vector<1x4xf32>,
    %74 = arith.index_cast %69 : i32 to index
    %c0_33 = arith.constant 0 : index
    %75 = vector.load %arg2[%74, %c0_33] : memref<4x3xf32, #tpu.memory_space<vmem>>, vector<1x3xf32>
    %76 = arith.index_cast %c5_i32 : i32 to index
    %c0_34 = arith.constant 0 : index
    %77 = vector.load %arg4[%76, %c0_34] : memref<8x3xf32, #tpu.memory_space<vmem>>, vector<1x3xf32>
    tpu.vector_store %arg4[%76, %c0_34], %75 {strides = array<i32>} : memref<8x3xf32, #tpu.memory_space<vmem>>, vector<1x3xf32>,
    %c6_i32 = arith.constant 6 : i32
    %78 = arith.index_cast %c6_i32 : i32 to index
    %79 = memref.load %arg0[%78] : memref<8xi32, #tpu.memory_space<smem>>
    %c0_i32_35 = arith.constant 0 : i32
    %80 = arith.cmpi slt, %79, %c0_i32_35 : i32
    %c4_i32_36 = arith.constant 4 : i32
    %81 = arith.addi %79, %c4_i32_36 : i32
    %82 = arith.select %80, %81, %79 : i32
    %83 = arith.index_cast %82 : i32 to index
    %c0_37 = arith.constant 0 : index
    %84 = vector.load %arg1[%83, %c0_37] : memref<4x4xf32, #tpu.memory_space<vmem>>, vector<1x4xf32>
    %85 = arith.index_cast %c6_i32 : i32 to index
    %c0_38 = arith.constant 0 : index
    %86 = vector.load %arg3[%85, %c0_38] : memref<8x4xf32, #tpu.memory_space<vmem>>, vector<1x4xf32>
    tpu.vector_store %arg3[%85, %c0_38], %84 {strides = array<i32>} : memref<8x4xf32, #tpu.memory_space<vmem>>, vector<1x4xf32>,
    %87 = arith.index_cast %82 : i32 to index
    %c0_39 = arith.constant 0 : index
    %88 = vector.load %arg2[%87, %c0_39] : memref<4x3xf32, #tpu.memory_space<vmem>>, vector<1x3xf32>
    %89 = arith.index_cast %c6_i32 : i32 to index
    %c0_40 = arith.constant 0 : index
    %90 = vector.load %arg4[%89, %c0_40] : memref<8x3xf32, #tpu.memory_space<vmem>>, vector<1x3xf32>
    tpu.vector_store %arg4[%89, %c0_40], %88 {strides = array<i32>} : memref<8x3xf32, #tpu.memory_space<vmem>>, vector<1x3xf32>,
    %c7_i32 = arith.constant 7 : i32
    %91 = arith.index_cast %c7_i32 : i32 to index
    %92 = memref.load %arg0[%91] : memref<8xi32, #tpu.memory_space<smem>>
    %c0_i32_41 = arith.constant 0 : i32
    %93 = arith.cmpi slt, %92, %c0_i32_41 : i32
    %c4_i32_42 = arith.constant 4 : i32
    %94 = arith.addi %92, %c4_i32_42 : i32
    %95 = arith.select %93, %94, %92 : i32
    %96 = arith.index_cast %95 : i32 to index
    %c0_43 = arith.constant 0 : index
    %97 = vector.load %arg1[%96, %c0_43] : memref<4x4xf32, #tpu.memory_space<vmem>>, vector<1x4xf32>
    %98 = arith.index_cast %c7_i32 : i32 to index
    %c0_44 = arith.constant 0 : index
    %99 = vector.load %arg3[%98, %c0_44] : memref<8x4xf32, #tpu.memory_space<vmem>>, vector<1x4xf32>
    tpu.vector_store %arg3[%98, %c0_44], %97 {strides = array<i32>} : memref<8x4xf32, #tpu.memory_space<vmem>>, vector<1x4xf32>,
    %100 = arith.index_cast %95 : i32 to index
    %c0_45 = arith.constant 0 : index
    %101 = vector.load %arg2[%100, %c0_45] : memref<4x3xf32, #tpu.memory_space<vmem>>, vector<1x3xf32>
    %102 = arith.index_cast %c7_i32 : i32 to index
    %c0_46 = arith.constant 0 : index
    %103 = vector.load %arg4[%102, %c0_46] : memref<8x3xf32, #tpu.memory_space<vmem>>, vector<1x3xf32>
    tpu.vector_store %arg4[%102, %c0_46], %101 {strides = array<i32>} : memref<8x3xf32, #tpu.memory_space<vmem>>, vector<1x3xf32>,
    %c8_i32 = arith.constant 8 : i32
    return
  }
}

</mosaic_0001>

<bundles_post_ra>
// kernel: tpu_custom_call.1
= control target key start
LH: loop header
LB: loop body
LE: loop exit
PB: predicated region body
PF: predicated region fallthrough
CT: control target
= control target key end

     0   :  { %10 = vsyncpa [#allocation4], 0  ;;  %s361_s0 = inlined_call_operand.hbm [shape: s32[8], index: 0, kind: input, shape index: {}]   ;;  %s362_s1 = inlined_call_operand.hbm [shape: f32[4,4], index: 1, kind: input, shape index: {}]   ;;  %s363_s2 = inlined_call_operand.vmem [shape: f32[4,3], index: 2, kind: input, shape index: {}]   ;;  %s364_s3 = inlined_call_operand.vmem [shape: f32[8,4], index: 3, kind: output, shape index: {0}]   ;;  %s365_s4 = inlined_call_operand.vmem [shape: f32[8,3], index: 4, kind: output, shape index: {1}]  }
   0x1   :  { %11 = vsyncpa [#allocation3], 0  ;;  %s156_s17 = scalar_lea.hbm %s361_s0, 16 }
   0x2   :  { %p157_p0 = scmp.ne.s32.totalorder %s361_s0, %s156_s17  ;;  %p160_p1 = scmp.lt.u32.totalorder %s156_s17, %s361_s0 }
   0x4   :  { %p162_p2 = pnand %p160_p1, %p157_p0 }
   0x6   :  { %165 = shalt.err (!%p162_p2)
}
   0x7   :  { %s192_s22 = smov [#allocation2]   ;;  %s193_s25 = smov [#allocation5]  }
   0x8   :  { %19 = dma.hbm_to_smem %s361_s0, 16, %s192_s22, [#allocation4]  }
   0x9   :  { %s26_s26 = sshll.u32 %s193_s25, 4  ;;  %s166_s29 = scalar_lea.hbm %s362_s1, 64  ;;  %s27_s26 = int_to_ptr.vmem [resolvable:$true] %s26_s26 }
   0xa   :  { %p167_p3 = scmp.ne.s32.totalorder %s362_s1, %s166_s29  ;;  %p170_p4 = scmp.lt.u32.totalorder %s166_s29, %s362_s1 }
   0xc   :  { %p172_p5 = pnand %p170_p4, %p167_p3 }
   0xe   :  { %175 = shalt.err (!%p172_p5)
}
   0xf   :  { %s176_s8 = scalar_lea.vmem %s27_s26, 64  ;;  %p181_p7 = scmp.lt.s32.totalorder %s27_s26, %s27_s26 }
  0x10   :  { %p177_p6 = scmp.ne.s32.totalorder %s27_s26, %s176_s8  ;;  %p182_p8 = scmp.lt.s32.totalorder %s176_s8, %s176_s8 }
  0x12   :  { %p183_p9 = por %p182_p8, %p181_p7 }
  0x14   :  { %p184_p10 = pnand %p183_p9, %p177_p6 }
  0x16   :  { %187 = shalt.err (!%p184_p10)
}
  0x17   :  { %29 = dma.hbm_to_vmem [thread:$0]  %s362_s1, 64, %s27_s26, [#allocation3]  }
  0x18   :  { %188 = dma.done.wait [#allocation4], 16  }
  0x19   :  { %189 = vsyncadd [#allocation4], 4294967280 }
  0x1a   :  { %190 = dma.done.wait [#allocation3], 64  }
  0x1b   :  { %191 = vsyncadd [#allocation3], 4294967232 }
  0x1c   :  { %38 = sfence }
  0x1d   :  { %s39_s10 = sld [smem:[#allocation2]]  ;;  %s147_s11 = sld [smem:[#allocation2 + $0x1]]  ;;  %vm45_vm0 = vcmask 24576   ;;  %vm49_vm1 = vcmask 16384  }
  0x1e   :  { %s243_s12 = sld [smem:[#allocation2 + $0x2]]  ;;  %s245_s13 = sld [smem:[#allocation2 + $0x3]] }
  0x1f   :  { %s247_s14 = sld [smem:[#allocation2 + $0x4]]  ;;  %s249_s15 = sld [smem:[#allocation2 + $0x5]] }
  0x20   :  { %s251_s16 = sld [smem:[#allocation2 + $0x6]]  ;;  %s253_s17 = sld [smem:[#allocation2 + $0x7]] }
  0x23   :  { %p40_p11 = scmp.lt.s32.totalorder %s39_s10, 0  ;;  %s41_s1 = sadd.s32 4, %s39_s10 }
  0x24   :  { %p52_p12 = scmp.lt.s32.totalorder %s147_s11, 0  ;;  %s53_s18 = sadd.s32 4, %s147_s11 }
  0x25   :  { %s367_s1 = smov (!%p40_p11, %s41_s1), %s39_s10  ;;  %p62_p13 = scmp.lt.s32.totalorder %s243_s12, 0 }
  0x26   :  { %s369_s18 = smov (!%p52_p12, %s53_s18), %s147_s11  ;;  %s47_s21 = scalar_lea.vmem %s363_s2, %s367_s1 }
  0x27   :  { %s43_s22 = scalar_lea.vmem [#allocation5], %s367_s1  ;;  %v48_v1 = vld [vmem:[%s47_s21] sm:$0x1]  ;;  %s58_s25 = scalar_lea.vmem %s363_s2, %s369_s18 }
  0x28   :  { %v44_v0 = vld [vmem:[%s43_s22] sm:$0x1]  ;;  %50 = vst.msk [vmem:[%s365_s4] sm:$0x1] %vm49_vm1, %v48_v1  ;;  %s55_s30 = scalar_lea.vmem [#allocation5], %s369_s18  ;;  %s63_s5 = sadd.s32 4, %s243_s12 }
  0x29   :  { %46 = vst.msk [vmem:[%s364_s3] sm:$0x1] %vm45_vm0, %v44_v0  ;;  %v56_v2 = vld [vmem:[%s55_s30] sm:$0x1]  ;;  %p72_p0 = scmp.lt.s32.totalorder %s245_s13, 0  ;;  %s73_s9 = sadd.s32 4, %s245_s13 }
  0x2a   :  { %v59_v3 = vld [vmem:[%s58_s25] sm:$0x1]  ;;  %57 = vst.msk [vmem:[%s364_s3 + $0x1] sm:$0x1] %vm45_vm0, %v56_v2  ;;  %s371_s5 = smov (!%p62_p13, %s63_s5), %s243_s12  ;;  %p82_p1 = scmp.lt.s32.totalorder %s247_s14, 0 }
  0x2b   :  { %60 = vst.msk [vmem:[%s365_s4 + $0x1] sm:$0x1] %vm49_vm1, %v59_v3  ;;  %s373_s9 = smov (!%p72_p0, %s73_s9), %s245_s13  ;;  %s68_s1 = scalar_lea.vmem %s363_s2, %s371_s5 }
  0x2c   :  { %s65_s18 = scalar_lea.vmem [#allocation5], %s371_s5  ;;  %v69_v5 = vld [vmem:[%s68_s1] sm:$0x1]  ;;  %s78_s21 = scalar_lea.vmem %s363_s2, %s373_s9 }
  0x2d   :  { %v66_v4 = vld [vmem:[%s65_s18] sm:$0x1]  ;;  %70 = vst.msk [vmem:[%s365_s4 + $0x2] sm:$0x1] %vm49_vm1, %v69_v5  ;;  %s75_s24 = scalar_lea.vmem [#allocation5], %s373_s9  ;;  %s83_s25 = sadd.s32 4, %s247_s14 }
  0x2e   :  { %67 = vst.msk [vmem:[%s364_s3 + $0x2] sm:$0x1] %vm45_vm0, %v66_v4  ;;  %v76_v6 = vld [vmem:[%s75_s24] sm:$0x1]  ;;  %p92_p2 = scmp.lt.s32.totalorder %s249_s15, 0  ;;  %s93_s30 = sadd.s32 4, %s249_s15 }
  0x2f   :  { %v79_v7 = vld [vmem:[%s78_s21] sm:$0x1]  ;;  %77 = vst.msk [vmem:[%s364_s3 + $0x3] sm:$0x1] %vm45_vm0, %v76_v6  ;;  %s375_s25 = smov (!%p82_p1, %s83_s25), %s247_s14  ;;  %p102_p3 = scmp.lt.s32.totalorder %s251_s16, 0 }
  0x30   :  { %80 = vst.msk [vmem:[%s365_s4 + $0x3] sm:$0x1] %vm49_vm1, %v79_v7  ;;  %s377_s30 = smov (!%p92_p2, %s93_s30), %s249_s15  ;;  %s88_s7 = scalar_lea.vmem %s363_s2, %s375_s25 }
  0x31   :  { %s85_s8 = scalar_lea.vmem [#allocation5], %s375_s25  ;;  %v89_v9 = vld [vmem:[%s88_s7] sm:$0x1]  ;;  %s98_s10 = scalar_lea.vmem %s363_s2, %s377_s30 }
  0x32   :  { %v86_v8 = vld [vmem:[%s85_s8] sm:$0x1]  ;;  %90 = vst.msk [vmem:[%s365_s4 + $0x4] sm:$0x1] %vm49_vm1, %v89_v9  ;;  %s95_s18 = scalar_lea.vmem [#allocation5], %s377_s30  ;;  %s103_s19 = sadd.s32 4, %s251_s16 }
  0x33   :  { %87 = vst.msk [vmem:[%s364_s3 + $0x4] sm:$0x1] %vm45_vm0, %v86_v8  ;;  %v96_v10 = vld [vmem:[%s95_s18] sm:$0x1]  ;;  %p112_p4 = scmp.lt.s32.totalorder %s253_s17, 0  ;;  %s113_s12 = sadd.s32 4, %s253_s17 }
  0x34   :  { %v99_v11 = vld [vmem:[%s98_s10] sm:$0x1]  ;;  %97 = vst.msk [vmem:[%s364_s3 + $0x5] sm:$0x1] %vm45_vm0, %v96_v10  ;;  %s379_s19 = smov (!%p102_p3, %s103_s19), %s251_s16 }
  0x35   :  { %100 = vst.msk [vmem:[%s365_s4 + $0x5] sm:$0x1] %vm49_vm1, %v99_v11  ;;  %s381_s12 = smov (!%p112_p4, %s113_s12), %s253_s17  ;;  %s108_s25 = scalar_lea.vmem %s363_s2, %s379_s19 }
  0x36   :  { %s105_s26 = scalar_lea.vmem [#allocation5], %s379_s19  ;;  %v109_v13 = vld [vmem:[%s108_s25] sm:$0x1]  ;;  %s118_s29 = scalar_lea.vmem %s363_s2, %s381_s12 }
  0x37   :  { %v106_v12 = vld [vmem:[%s105_s26] sm:$0x1]  ;;  %110 = vst.msk [vmem:[%s365_s4 + $0x6] sm:$0x1] %vm49_vm1, %v109_v13  ;;  %s115_s17 = scalar_lea.vmem [#allocation5], %s381_s12 }
  0x38   :  { %107 = vst.msk [vmem:[%s364_s3 + $0x6] sm:$0x1] %vm45_vm0, %v106_v12  ;;  %v116_v14 = vld [vmem:[%s115_s17] sm:$0x1] }
  0x39   :  { %v119_v15 = vld [vmem:[%s118_s29] sm:$0x1]  ;;  %117 = vst.msk [vmem:[%s364_s3 + $0x7] sm:$0x1] %vm45_vm0, %v116_v14 }
  0x3a   :  { %120 = vst.msk [vmem:[%s365_s4 + $0x7] sm:$0x1] %vm49_vm1, %v119_v15 }
  0x3b   :  { %129 = vsyncpa [#allocation3], 1 }
  0x3c   :  { %130 = vsyncpa [#allocation4], 1 }

</bundles_post_ra>
